<compile_context>
chip_gen: v5e
topology: v5e:2x2
jax: 0.10.0
libtpu: 0.0.40
codegen_flags: <defaults>
</compile_context>

<pallas_src>
import math

import jax
import jax.numpy as jnp
from jax import lax
from jax.experimental import pallas as pl
from jax.experimental.pallas import tpu as pltpu

LANES = 128
SUBLANES = 8
DEFAULT_BLOCK_ROWS = 4096   # (4096, 128) f32 block = 2 MiB per input


def _cdiv(a, b):
    return -(-a // b)


def _round_up(a, b):
    return _cdiv(a, b) * b


def _num_tensorcores():
    """TensorCores per chip: 1 on v5e/v6e, 2 on v7x-class chips."""
    try:
        dev = jax.devices()[0]
        kind = str(getattr(dev, "device_kind", "")).lower()
        if "v7" in kind:
            return 2
        nc = getattr(dev, "num_cores", None)
        if nc:
            return min(int(nc), 2)
    except Exception:
        pass
    return 1


def _focal_elementwise(x, t, gamma, alpha):
    """Plain-JAX elementwise focal loss (reference + <128-element tail)."""
    x = x.astype(jnp.float32)
    t = t.astype(jnp.float32)
    bce = jnp.maximum(x, 0.0) - x * t + jnp.log1p(jnp.exp(-jnp.abs(x)))
    p = jax.nn.sigmoid(x)
    p_t = t * p + (1.0 - t) * (1.0 - p)
    alpha_factor = t * alpha + (1.0 - t) * (1.0 - alpha)
    return bce * alpha_factor * (1.0 - p_t) ** gamma


def _make_focal_kernel(gamma, alpha, rows_valid, block_rows, steps):
    gamma = float(gamma)
    alpha = float(alpha)

    def _modulate(y):
        # (1 - p_t) ** gamma without jnp.power (exp+log on the EUP) for the
        # common gamma values.
        if gamma == 0.0:
            return jnp.ones_like(y)
        if gamma == 0.5:
            return jnp.sqrt(y)
        if gamma == 1.0:
            return y
        if gamma == 1.5:
            return y * jnp.sqrt(y)
        if gamma == 2.0:
            return y * y
        return jnp.power(y, gamma)

    def kernel(pred_ref, true_ref, out_ref):
        c = pl.program_id(0)      # core-parallel split (both TCs on v7x)
        i = pl.program_id(1)      # sequential chunk within the split

        @pl.when(i == 0)
        def _():
            out_ref[...] = jnp.zeros_like(out_ref)

        x = pred_ref[...].astype(jnp.float32)
        t = true_ref[...].astype(jnp.float32)

        # One exp per element serves both the stable BCE log-term and sigmoid:
        #   bce     = max(x, 0) - x*t + log1p(exp(-|x|))
        #   sigmoid = where(x >= 0, 1, exp(-|x|)) / (1 + exp(-|x|))
        e = jnp.exp(-jnp.abs(x))
        bce = jnp.maximum(x, 0.0) - x * t + jnp.log1p(e)
        inv = pl.reciprocal(1.0 + e, approx=False)   # exact: keeps 1e-5 rtol
        p = jnp.where(x >= 0.0, 1.0, e) * inv

        p_t = t * p + (1.0 - t) * (1.0 - p)
        alpha_factor = t * alpha + (1.0 - t) * (1.0 - alpha)
        loss = bce * alpha_factor * _modulate(1.0 - p_t)

        def _partial(v):
            # (block_rows, 128) -> (8, 128): tile-aligned reshape + cross-vreg
            # VPU adds; the single cross-lane reduction happens once, in the
            # wrapper, on a tiny array.
            return v.reshape(block_rows // SUBLANES, SUBLANES, LANES).sum(axis=0)

        # Only the (at most one) trailing ragged block needs masking; the mask
        # limit is BLOCK-LOCAL (scalar subtract), so there is no large int32
        # flat-index product and no 2^31-element ceiling.
        gb = c * steps + i                              # global block index
        block_ragged = (gb + 1) * block_rows > rows_valid

        @pl.when(block_ragged)
        def _():
            local_rows = lax.broadcasted_iota(jnp.int32, (block_rows, LANES), 0)
            valid = local_rows < (rows_valid - gb * block_rows)
            out_ref[...] += _partial(jnp.where(valid, loss, 0.0))[None]

        @pl.when(jnp.logical_not(block_ragged))
        def _():
            out_ref[...] += _partial(loss)[None]

    return kernel


def _run_main_kernel(pf_main, tf_main, gamma, alpha, rows, block_rows, splits):
    num_blocks = _cdiv(rows, block_rows)
    splits = splits if (splits > 1 and num_blocks >= splits) else 1
    steps = _cdiv(num_blocks, splits)

    def in_idx(c, i):
        # Clamp so any trailing grid point (splits*steps > num_blocks) simply
        # re-reads the last real block; its contribution is masked to zero.
        return (jnp.minimum(c * steps + i, num_blocks - 1), 0)

    in_spec = pl.BlockSpec((block_rows, LANES), in_idx)
    out_spec = pl.BlockSpec((1, SUBLANES, LANES), lambda c, i: (c, 0, 0))

    if splits > 1:
        # Engage both TensorCores on multi-core chips: each core owns one
        # output slot and streams its own contiguous range of blocks.
        semantics = (pltpu.CORE_PARALLEL, pltpu.ARBITRARY)
    else:
        semantics = ("arbitrary", "arbitrary")

    return pl.pallas_call(
        _make_focal_kernel(gamma, alpha, rows, block_rows, steps),
        out_shape=jax.ShapeDtypeStruct((splits, SUBLANES, LANES), jnp.float32),
        grid_spec=pltpu.PrefetchScalarGridSpec(
            num_scalar_prefetch=0,
            grid=(splits, steps),
            in_specs=[in_spec, in_spec],
            out_specs=out_spec,
        ),
        compiler_params=pltpu.CompilerParams(dimension_semantics=semantics),
    )(pf_main, tf_main)


def focal_loss(pred, true, gamma=1.5, alpha=0.25, reduction="mean",
               block_rows=DEFAULT_BLOCK_ROWS, num_splits=None):
    """Focal loss over BCEWithLogits (PyTorch FocalLoss.forward).

    `pred`/`true` may be any matching shape; any float dtype (upcast to f32
    in-kernel — pass bf16 targets/logits to cut HBM traffic). reduction in
    {'mean', 'sum'} (BCEWithLogitsLoss default is 'mean').
    """
    assert pred.shape == true.shape
    n = int(math.prod(pred.shape))
    assert n > 0

    pf = pred.reshape(-1)     # contiguous row-major reshape: free bitcast
    tf = true.reshape(-1)

    rows = n // LANES
    rem = n - rows * LANES

    total = jnp.float32(0.0)
    if rem:
        # <128-element remainder: fold in with plain JAX (negligible work)
        # instead of padding/copying the whole array.
        total = jnp.sum(_focal_elementwise(pf[rows * LANES:], tf[rows * LANES:],
                                           gamma, alpha))

    if rows > 0:
        if rem:
            # Non-multiple-of-128 sizes: 128-aligned prefix.  (This slice may
            # materialize one copy in XLA; sizes that ARE multiples of 128 —
            # the common case for NCHW logits — take the zero-copy path.)
            pf_main, tf_main = pf[:rows * LANES], tf[:rows * LANES]
        else:
            pf_main, tf_main = pf, tf

        # Row alignment: 8 rows for 32-bit inputs, 16 for bf16/f16 (packed
        # sublanes), 32 for int8.
        itemsize = min(jnp.dtype(pred.dtype).itemsize,
                       jnp.dtype(true.dtype).itemsize)
        row_align = max(SUBLANES, 32 // max(int(itemsize), 1))
        br = min(int(block_rows), _round_up(rows, row_align))
        br = max(row_align, _round_up(br, row_align))

        pf_main = pf_main.reshape(rows, LANES)
        tf_main = tf_main.reshape(rows, LANES)

        splits = _num_tensorcores() if num_splits is None else max(1, int(num_splits))
        try:
            partials = _run_main_kernel(pf_main, tf_main, gamma, alpha,
                                        rows, br, splits)
        except Exception:
            if splits <= 1:
                raise
            # Multi-core grid sharding unavailable on this chip/runtime:
            # fall back to the plain sequential grid.
            partials = _run_main_kernel(pf_main, tf_main, gamma, alpha,
                                        rows, br, 1)

        total = total + jnp.sum(partials)   # tiny (splits*8*128) final reduce

    if reduction == "mean":
        return total / jnp.float32(n)
    elif reduction == "sum":
        return total
    else:
        # TODO(synk): reduction='none' (elementwise output) not wired up; the
        # module's default BCEWithLogitsLoss reduction is 'mean'.
        raise NotImplementedError("reduction='none' not implemented")


def _reference_focal_loss(pred, true, gamma=1.5, alpha=0.25):
    """Pure-JAX reference mirroring the PyTorch module exactly (mean)."""
    return jnp.mean(_focal_elementwise(pred, true, gamma, alpha))


if __name__ == "__main__":
    key = jax.random.PRNGKey(0)

    # 1) NCHW class logits + binary targets; total size multiple of 128
    #    (zero-copy fast path, single block, no masking).
    k1, k2, key = jax.random.split(key, 3)
    pred = jax.random.normal(k1, (2, 4, 16, 16), dtype=jnp.float32) * 2.0
    true = (jax.random.uniform(k2, (2, 4, 16, 16)) > 0.5).astype(jnp.float32)
    out = jax.block_until_ready(focal_loss(pred, true, gamma=1.5, alpha=0.25))
    ref = _reference_focal_loss(pred, true)
    assert jnp.allclose(out, ref, rtol=2e-5, atol=1e-6), (out, ref)

    # 2) Ragged size (4332 = 33*128 + 108): exercises the in-kernel ragged-row
    #    mask, the <128-element JAX tail, and multi-step accumulation.
    k1, k2, key = jax.random.split(key, 3)
    pred = jax.random.normal(k1, (1, 3, 38, 38), dtype=jnp.float32) * 3.0
    true = (jax.random.uniform(k2, (1, 3, 38, 38)) > 0.7).astype(jnp.float32)
    out = jax.block_until_ready(focal_loss(pred, true, block_rows=16))
    ref = _reference_focal_loss(pred, true)
    assert jnp.allclose(out, ref, rtol=2e-5, atol=1e-6), (out, ref)

    # 3) Multi-block accumulation + bf16 targets (binary -> exact in bf16),
    #    demonstrating the reduced-bandwidth target path.
    k1, k2, key = jax.random.split(key, 3)
    pred = jax.random.normal(k1, (4, 8, 32, 32), dtype=jnp.float32)
    true = (jax.random.uniform(k2, (4, 8, 32, 32)) > 0.5).astype(jnp.bfloat16)
    out = jax.block_until_ready(focal_loss(pred, true, block_rows=32))
    ref = _reference_focal_loss(pred, true.astype(jnp.float32))
    assert jnp.allclose(out, ref, rtol=2e-5, atol=1e-6), (out, ref)

    # 4) 'sum' reduction sanity check at the default block size.
    k1, k2, key = jax.random.split(key, 3)
    pred = jax.random.normal(k1, (2, 8, 16, 16), dtype=jnp.float32)
    true = (jax.random.uniform(k2, (2, 8, 16, 16)) > 0.5).astype(jnp.float32)
    out = jax.block_until_ready(focal_loss(pred, true, reduction="sum"))
    ref = _reference_focal_loss(pred, true) * pred.size
    assert jnp.allclose(out, ref, rtol=2e-5, atol=1e-3), (out, ref)

    print("KERNEL_OK")
</pallas_src>

<mosaic_0001>
module attributes {stable_mosaic.version = 11 : i64} {
  func.func @kernel(%arg0: i32, %arg1: i32, %arg2: memref<16x128xf32, #tpu.memory_space<vmem>>, %arg3: memref<16x128xf32, #tpu.memory_space<vmem>>, %arg4: memref<1x8x128xf32, #tpu.memory_space<vmem>>) attributes {dimension_semantics = [#tpu.dimension_semantics<arbitrary>, #tpu.dimension_semantics<arbitrary>], iteration_bounds = array<i64: 1, 1>, scalar_prefetch = 0 : i64, scratch_operands = 0 : i64, tpu.core_type = #tpu.core_type<tc>, window_params = [{transform_indices = @transform_0, window_bounds = array<i64: 16, 128>}, {transform_indices = @transform_1, window_bounds = array<i64: 16, 128>}, {transform_indices = @transform_2, window_bounds = array<i64: 1, 8, 128>}]} {
    %c0_i32 = arith.constant 0 : i32
    %0 = arith.cmpi eq, %arg1, %c0_i32 : i32
    %1 = arith.extui %0 : i1 to i32
    %c0_i32_0 = arith.constant 0 : i32
    %2 = arith.cmpi ne, %1, %c0_i32_0 : i32
    scf.if %2 {
      %cst_18 = arith.constant 0.000000e+00 : f32
      %53 = vector.broadcast %cst_18 : f32 to vector<1x8x128xf32>
      %c0_19 = arith.constant 0 : index
      %c0_20 = arith.constant 0 : index
      %c0_21 = arith.constant 0 : index
      %54 = vector.load %arg4[%c0_19, %c0_20, %c0_21] : memref<1x8x128xf32, #tpu.memory_space<vmem>>, vector<1x8x128xf32>
      tpu.vector_store %arg4[%c0_19, %c0_20, %c0_21], %53 {strides = array<i32>} : memref<1x8x128xf32, #tpu.memory_space<vmem>>, vector<1x8x128xf32>,
    } else {
    }
    %c0 = arith.constant 0 : index
    %c0_1 = arith.constant 0 : index
    %3 = vector.load %arg2[%c0, %c0_1] : memref<16x128xf32, #tpu.memory_space<vmem>>, vector<16x128xf32>
    %c0_2 = arith.constant 0 : index
    %c0_3 = arith.constant 0 : index
    %4 = vector.load %arg3[%c0_2, %c0_3] : memref<16x128xf32, #tpu.memory_space<vmem>>, vector<16x128xf32>
    %5 = math.absf %3 : vector<16x128xf32>
    %cst = arith.constant 0.000000e+00 : f32
    %6 = vector.broadcast %cst : f32 to vector<16x128xf32>
    %7 = arith.subf %6, %5 : vector<16x128xf32>
    %8 = math.exp %7 : vector<16x128xf32>
    %cst_4 = arith.constant 0.000000e+00 : f32
    %9 = vector.broadcast %cst_4 : f32 to vector<16x128xf32>
    %10 = arith.maximumf %3, %9 : vector<16x128xf32>
    %11 = arith.mulf %3, %4 : vector<16x128xf32>
    %12 = arith.subf %10, %11 : vector<16x128xf32>
    %13 = math.log1p %8 : vector<16x128xf32>
    %14 = arith.addf %12, %13 : vector<16x128xf32>
    %cst_5 = arith.constant 1.000000e+00 : f32
    %15 = vector.broadcast %cst_5 : f32 to vector<16x128xf32>
    %16 = arith.addf %15, %8 : vector<16x128xf32>
    %17 = tpu.reciprocal %16 : vector<16x128xf32> -> vector<16x128xf32>
    %cst_6 = arith.constant 0.000000e+00 : f32
    %18 = vector.broadcast %cst_6 : f32 to vector<16x128xf32>
    %19 = arith.cmpf oge, %3, %18 : vector<16x128xf32>
    %cst_7 = arith.constant 1.000000e+00 : f32
    %20 = vector.broadcast %cst_7 : f32 to vector<16x128xf32>
    %21 = arith.select %19, %20, %8 : vector<16x128xi1>, vector<16x128xf32>
    %22 = arith.mulf %21, %17 : vector<16x128xf32>
    %23 = arith.mulf %4, %22 : vector<16x128xf32>
    %cst_8 = arith.constant 1.000000e+00 : f32
    %24 = vector.broadcast %cst_8 : f32 to vector<16x128xf32>
    %25 = arith.subf %24, %4 : vector<16x128xf32>
    %cst_9 = arith.constant 1.000000e+00 : f32
    %26 = vector.broadcast %cst_9 : f32 to vector<16x128xf32>
    %27 = arith.subf %26, %22 : vector<16x128xf32>
    %28 = arith.mulf %25, %27 : vector<16x128xf32>
    %29 = arith.addf %23, %28 : vector<16x128xf32>
    %cst_10 = arith.constant 2.500000e-01 : f32
    %30 = vector.broadcast %cst_10 : f32 to vector<16x128xf32>
    %31 = arith.mulf %4, %30 : vector<16x128xf32>
    %cst_11 = arith.constant 1.000000e+00 : f32
    %32 = vector.broadcast %cst_11 : f32 to vector<16x128xf32>
    %33 = arith.subf %32, %4 : vector<16x128xf32>
    %cst_12 = arith.constant 7.500000e-01 : f32
    %34 = vector.broadcast %cst_12 : f32 to vector<16x128xf32>
    %35 = arith.mulf %33, %34 : vector<16x128xf32>
    %36 = arith.addf %31, %35 : vector<16x128xf32>
    %37 = arith.mulf %14, %36 : vector<16x128xf32>
    %cst_13 = arith.constant 1.000000e+00 : f32
    %38 = vector.broadcast %cst_13 : f32 to vector<16x128xf32>
    %39 = arith.subf %38, %29 : vector<16x128xf32>
    %40 = math.sqrt %39 : vector<16x128xf32>
    %41 = arith.mulf %39, %40 : vector<16x128xf32>
    %42 = arith.mulf %37, %41 : vector<16x128xf32>
    %c1_i32 = arith.constant 1 : i32
    %43 = arith.muli %arg0, %c1_i32 : i32
    %44 = arith.addi %43, %arg1 : i32
    %c1_i32_14 = arith.constant 1 : i32
    %45 = arith.addi %44, %c1_i32_14 : i32
    %c16_i32 = arith.constant 16 : i32
    %46 = arith.muli %45, %c16_i32 : i32
    %c16_i32_15 = arith.constant 16 : i32
    %47 = arith.cmpi sgt, %46, %c16_i32_15 : i32
    %48 = arith.extui %47 : i1 to i32
    %c0_i32_16 = arith.constant 0 : i32
    %49 = arith.cmpi ne, %48, %c0_i32_16 : i32
    scf.if %49 {
      %53 = tpu.iota {dimensions = array<i32: 0>} : vector<16x128xi32>
      %c16_i32_18 = arith.constant 16 : i32
      %54 = arith.muli %44, %c16_i32_18 : i32
      %c16_i32_19 = arith.constant 16 : i32
      %55 = arith.subi %c16_i32_19, %54 : i32
      %56 = vector.broadcast %55 : i32 to vector<16x128xi32>
      %57 = arith.cmpi slt, %53, %56 : vector<16x128xi32>
      %c0_20 = arith.constant 0 : index
      %c0_21 = arith.constant 0 : index
      %c0_22 = arith.constant 0 : index
      %58 = vector.load %arg4[%c0_20, %c0_21, %c0_22] : memref<1x8x128xf32, #tpu.memory_space<vmem>>, vector<1x8x128xf32>
      %cst_23 = arith.constant 0.000000e+00 : f32
      %59 = vector.broadcast %cst_23 : f32 to vector<16x128xf32>
      %60 = arith.select %57, %42, %59 : vector<16x128xi1>, vector<16x128xf32>
      %61 = vector.shape_cast %60 : vector<16x128xf32> to vector<2x8x128xf32>
      %cst_24 = arith.constant dense<0.000000e+00> : vector<8x128xf32>
      %62 = vector.multi_reduction <add>, %61, %cst_24 [0] : vector<2x8x128xf32> to vector<8x128xf32>
      %63 = vector.shape_cast %62 : vector<8x128xf32> to vector<1x8x128xf32>
      %64 = arith.addf %58, %63 : vector<1x8x128xf32>
      %c0_25 = arith.constant 0 : index
      %c0_26 = arith.constant 0 : index
      %c0_27 = arith.constant 0 : index
      %65 = vector.load %arg4[%c0_25, %c0_26, %c0_27] : memref<1x8x128xf32, #tpu.memory_space<vmem>>, vector<1x8x128xf32>
      tpu.vector_store %arg4[%c0_25, %c0_26, %c0_27], %64 {strides = array<i32>} : memref<1x8x128xf32, #tpu.memory_space<vmem>>, vector<1x8x128xf32>,
    } else {
    }
    %true = arith.constant true
    %50 = arith.xori %47, %true : i1
    %51 = arith.extui %50 : i1 to i32
    %c0_i32_17 = arith.constant 0 : i32
    %52 = arith.cmpi ne, %51, %c0_i32_17 : i32
    scf.if %52 {
      %c0_18 = arith.constant 0 : index
      %c0_19 = arith.constant 0 : index
      %c0_20 = arith.constant 0 : index
      %53 = vector.load %arg4[%c0_18, %c0_19, %c0_20] : memref<1x8x128xf32, #tpu.memory_space<vmem>>, vector<1x8x128xf32>
      %54 = vector.shape_cast %42 : vector<16x128xf32> to vector<2x8x128xf32>
      %cst_21 = arith.constant dense<0.000000e+00> : vector<8x128xf32>
      %55 = vector.multi_reduction <add>, %54, %cst_21 [0] : vector<2x8x128xf32> to vector<8x128xf32>
      %56 = vector.shape_cast %55 : vector<8x128xf32> to vector<1x8x128xf32>
      %57 = arith.addf %53, %56 : vector<1x8x128xf32>
      %c0_22 = arith.constant 0 : index
      %c0_23 = arith.constant 0 : index
      %c0_24 = arith.constant 0 : index
      %58 = vector.load %arg4[%c0_22, %c0_23, %c0_24] : memref<1x8x128xf32, #tpu.memory_space<vmem>>, vector<1x8x128xf32>
      tpu.vector_store %arg4[%c0_22, %c0_23, %c0_24], %57 {strides = array<i32>} : memref<1x8x128xf32, #tpu.memory_space<vmem>>, vector<1x8x128xf32>,
    } else {
    }
    return
  }
  func.func @transform_0(%arg0: i32, %arg1: i32) -> (i32, i32) {
    %c1_i32 = arith.constant 1 : i32
    %0 = arith.muli %arg0, %c1_i32 : i32
    %1 = arith.addi %0, %arg1 : i32
    %c0_i32 = arith.constant 0 : i32
    %2 = arith.minsi %1, %c0_i32 : i32
    %c0_i32_0 = arith.constant 0 : i32
    %c0_i32_1 = arith.constant 0 : i32
    return %2, %c0_i32_0 : i32, i32
  }
  func.func @transform_1(%arg0: i32, %arg1: i32) -> (i32, i32) {
    %c1_i32 = arith.constant 1 : i32
    %0 = arith.muli %arg0, %c1_i32 : i32
    %1 = arith.addi %0, %arg1 : i32
    %c0_i32 = arith.constant 0 : i32
    %2 = arith.minsi %1, %c0_i32 : i32
    %c0_i32_0 = arith.constant 0 : i32
    %c0_i32_1 = arith.constant 0 : i32
    return %2, %c0_i32_0 : i32, i32
  }
  func.func @transform_2(%arg0: i32, %arg1: i32) -> (i32, i32, i32) {
    %c0_i32 = arith.constant 0 : i32
    %c0_i32_0 = arith.constant 0 : i32
    %c0_i32_1 = arith.constant 0 : i32
    return %arg0, %c0_i32, %c0_i32_0 : i32, i32, i32
  }
}

</mosaic_0001>

<bundles_post_ra>
// kernel: tpu_custom_call.1
= control target key start
LH: loop header
LB: loop body
LE: loop exit
PB: predicated region body
PF: predicated region fallthrough
CT: control target
= control target key end

     0   :  { %7 = vsyncpa [#allocation3], 0  ;;  %s415_s0 = inlined_call_operand.hbm [shape: f32[16,128], index: 0, kind: input, shape index: {}]   ;;  %s416_s1 = inlined_call_operand.hbm [shape: f32[16,128], index: 1, kind: input, shape index: {}]   ;;  %s417_s2 = inlined_call_operand.hbm [shape: f32[1,8,128], index: 2, kind: output, shape index: {}]  }
   0x1   :  { %8 = vsyncpa [#allocation6], 0 }
   0x2   :  { %9 = vsyncpa [#allocation4], 0  ;;  %s20_s11 = sshll.u32 %s415_s0, 4  ;;  %s342_s12 = smov [#allocation2]   ;;  %s21_s11 = int_to_ptr.hbm [resolvable:$true] %s20_s11 }
   0x3   :  { %s22_s13 = sshll.u32 %s342_s12, 4  ;;  %s39_s16 = sshll.u32 %s416_s1, 4  ;;  %s23_s13 = int_to_ptr.vmem [resolvable:$true] %s22_s13  ;;  %s40_s16 = int_to_ptr.hbm [resolvable:$true] %s39_s16 }
   0x4   :  { %s343_s17 = smov 128   ;;  %s344_s18 = smov 8  }
   0x5   :  { %28 = dma.hbm_to_vmem [thread:$0]  %s21_s11, 256, %s23_s13, [#allocation3], %s343_s17, %s343_s17, %s344_s18  }
   0x6   :  { %s345_s19 = smov [#allocation5]  }
   0x7   :  { %s41_s20 = sshll.u32 %s345_s19, 4  ;;  %s42_s20 = int_to_ptr.vmem [resolvable:$true] %s41_s20 }
   0x8   :  { %47 = dma.hbm_to_vmem [thread:$0]  %s40_s16, 256, %s42_s20, [#allocation6], %s343_s17, %s343_s17, %s344_s18  }
   0x9   :  { %336 = dma.done.wait [#allocation3], 256  }
   0xa   :  { %337 = vsyncadd [#allocation3], 4294967040 }
   0xb   :  { %338 = dma.done.wait [#allocation6], 256  }
   0xc   :  { %339 = vsyncadd [#allocation6], 4294967040  ;;  %v368_v0 = vld [vmem:[#allocation2] sm:$0xff]  ;;  %v370_v1 = vld [vmem:[#allocation2 + $0x8] sm:$0xff]  ;;  %s346_s0 = smov [#allocation7]   ;;  %s227_s23 = sshll.u32 %s417_s2, 4  ;;  %s228_s23 = int_to_ptr.hbm [resolvable:$true] %s227_s23 }
   0xd   :  { %v73_v2 = vand.u32 2147483647, %v368_v0  ;;  %v74_v3 = vand.u32 2147483647, %v370_v1  ;;  %vm137_vm4 = vcmp.ge.f32.partialorder %v368_v0, 0.0  ;;  %vm138_vm6 = vcmp.ge.f32.partialorder %v370_v1, 0.0 }
   0xe   :  { %v71_v28 = vld [vmem:[#allocation5] sm:$0xff]  ;;  %v72_v31 = vld [vmem:[#allocation5 + $0x8] sm:$0xff]  ;;  %v81_v59 = vmax.f32 %v368_v0, 0.0  ;;  %v82_v63 = vmax.f32 %v370_v1, 0.0  ;;  %s225_s1 = sshll.u32 %s346_s0, 4  ;;  %s226_s1 = int_to_ptr.vmem [resolvable:$true] %s225_s1 }
   0xf   :  { %v75_v4 = vsub.f32 0.0, %v73_v2  ;;  %v76_v5 = vsub.f32 0.0, %v74_v3  ;;  %v145_v38 = vsub.f32 1.0, %v71_v28  ;;  %v146_v40 = vsub.f32 1.0, %v72_v31 }
  0x10   :  { %v83_v60 = vmul.f32 %v71_v28, %v368_v0  ;;  %v84_v3 = vmul.f32 %v72_v31, %v370_v1  ;;  %v154_v1 = vmul.f32 0.25, %v72_v31 }
  0x11   :  { %v77_v6 = vmul.f32 1.442695, %v75_v4  ;;  %v79_v7 = vmul.f32 1.442695, %v76_v5 }
  0x13   :  { %248 = vpow2.f32 %v77_v6 }
  0x14   :  { %250 = vpow2.f32 %v79_v7 }
  0x19   :  { %v374_v8 = vpop.eup %248 }
  0x1a   :  { %v376_v9 = vpop.eup %250  ;;  %v87_v10 = vadd.f32 1.0, %v374_v8  ;;  %v139_v30 = vsel %vm137_vm4, 1.0, %v374_v8  ;;  %v90_v51 = vmul.f32 -0.5, %v374_v8  ;;  %v93_v56 = vand.u32 2147483647, %v374_v8 }
  0x1b   :  { %v96_v11 = vadd.f32 1.0, %v376_v9  ;;  %v140_v33 = vsel %vm138_vm6, 1.0, %v376_v9  ;;  %v99_v52 = vmul.f32 -0.5, %v376_v9  ;;  %v102_v61 = vand.u32 2147483647, %v376_v9 }
  0x1c   :  { %252 = vrcp.f32 %v87_v10  ;;  %vm114_vm0 = vweird.f32 %v87_v10  ;;  %v120_v15 = vand.u32 2147483648, %v87_v10  ;;  %v118_v18 = vand.u32 2147483647, %v87_v10 }
  0x1d   :  { %254 = vrcp.f32 %v96_v11  ;;  %v134_v19 = vand.u32 2147483648, %v96_v11  ;;  %vm128_vm2 = vweird.f32 %v96_v11  ;;  %v132_v21 = vand.u32 2147483647, %v96_v11 }
  0x1e   :  { %v121_v24 = vor.u32 1.1754944e-38, %v120_v15  ;;  %vm119_vm7 = vcmp.eq.f32.partialorder %v118_v18, 8.507059e+37  ;;  %256 = vlog2.f32 %v87_v10  ;;  %v91_v54 = vadd.f32 1.0, %v90_v51 }
  0x1f   :  { %v135_v27 = vor.u32 1.1754944e-38, %v134_v19  ;;  %vm133_vm9 = vcmp.eq.f32.partialorder %v132_v21, 8.507059e+37  ;;  %258 = vlog2.f32 %v96_v11  ;;  %v100_v57 = vadd.f32 1.0, %v99_v52 }
  0x20   :  { %v92_v5 = vmul.f32 %v374_v8, %v91_v54  ;;  %vm399_vm10 = vcmp.lt.f32.partialorder %v93_v56, 0.0004427343  ;;  %vm404_vm11 = vcmp.lt.f32.partialorder %v102_v61, 0.0004427343  ;;  %v86_v18 = vsub.f32 %v82_v63, %v84_v3 }
  0x22   :  { %v253_v12 = vpop.eup %252 }
  0x23   :  { %v255_v13 = vpop.eup %254  ;;  %v110_v14 = vmul.f32 %v253_v12, %v87_v10  ;;  %vm115_vm1 = vweird.f32 %v253_v12 }
  0x24   :  { %v124_v16 = vmul.f32 %v255_v13, %v96_v11  ;;  %vm129_vm3 = vweird.f32 %v255_v13  ;;  %vm381_vm5 = vmor %vm114_vm0, %vm115_vm1  ;;  %v257_v53 = vpop.eup %256  ;;  %v101_v11 = vmul.f32 %v376_v9, %v100_v57 }
  0x25   :  { %v111_v17 = vsub.f32 1.0, %v110_v14  ;;  %vm130_vm8 = vmor %vm128_vm2, %vm129_vm3  ;;  %v259_v55 = vpop.eup %258  ;;  %v89_v4 = vmul.f32 0.6931472, %v257_v53  ;;  %v153_v14 = vmul.f32 0.25, %v71_v28 }
  0x26   :  { %v125_v20 = vsub.f32 1.0, %v124_v16  ;;  %v98_v10 = vmul.f32 0.6931472, %v259_v55  ;;  %v155_v16 = vmul.f32 0.75, %v145_v38 }
  0x27   :  { %v112_v22 = vmul.f32 %v253_v12, %v111_v17  ;;  %v156_v17 = vmul.f32 0.75, %v146_v40  ;;  %v95_v19 = vsel %vm399_vm10, %v92_v5, %v89_v4 }
  0x28   :  { %v126_v25 = vmul.f32 %v255_v13, %v125_v20  ;;  %v104_v9 = vsel %vm404_vm11, %v101_v11, %v98_v10 }
  0x29   :  { %v113_v26 = vadd.f32 %v253_v12, %v112_v22 }
  0x2a   :  { %v127_v29 = vadd.f32 %v255_v13, %v126_v25  ;;  %v158_v25 = vadd.f32 %v156_v17, %v154_v1 }
  0x2b   :  { %v117_v32 = vsel %vm381_vm5, %v253_v12, %v113_v26  ;;  %v85_v12 = vsub.f32 %v81_v59, %v83_v60 }
  0x2c   :  { %v122_v34 = vsel %vm119_vm7, %v121_v24, %v117_v32  ;;  %v131_v35 = vsel %vm130_vm8, %v255_v13, %v127_v29  ;;  %v157_v24 = vadd.f32 %v155_v16, %v153_v14 }
  0x2d   :  { %v136_v36 = vsel %vm133_vm9, %v135_v27, %v131_v35  ;;  %v141_v37 = vmul.f32 %v139_v30, %v122_v34  ;;  %v105_v23 = vadd.f32 %v95_v19, %v85_v12  ;;  %v106_v27 = vadd.f32 %v104_v9, %v86_v18 }
  0x2e   :  { %v142_v39 = vmul.f32 %v140_v33, %v136_v36 }
  0x2f   :  { %v143_v41 = vmul.f32 %v141_v37, %v71_v28  ;;  %v147_v42 = vsub.f32 1.0, %v141_v37  ;;  %v159_v33 = vmul.f32 %v157_v24, %v105_v23  ;;  %v160_v35 = vmul.f32 %v158_v25, %v106_v27 }
  0x30   :  { %v144_v43 = vmul.f32 %v142_v39, %v72_v31  ;;  %v148_v44 = vsub.f32 1.0, %v142_v39 }
  0x31   :  { %v149_v45 = vmul.f32 %v147_v42, %v145_v38 }
  0x32   :  { %v150_v46 = vmul.f32 %v148_v44, %v146_v40 }
  0x33   :  { %v151_v47 = vadd.f32 %v149_v45, %v143_v41 }
  0x34   :  { %v152_v48 = vadd.f32 %v150_v46, %v144_v43 }
  0x35   :  { %v161_v49 = vsub.f32 1.0, %v151_v47 }
  0x36   :  { %v162_v50 = vsub.f32 1.0, %v152_v48 }
  0x37   :  { %260 = vrsqrt.f32 %v161_v49  ;;  %vm170_vm12 = vcmp.eq.f32.partialorder %v161_v49, inf  ;;  %v173_v28 = vand.u32 2147483648, %v161_v49  ;;  %vm172_vm13 = vcmp.eq.f32.partialorder %v161_v49, 0.0 }
  0x38   :  { %262 = vrsqrt.f32 %v162_v50  ;;  %vm182_vm14 = vcmp.eq.f32.partialorder %v162_v50, inf  ;;  %v185_v31 = vand.u32 2147483648, %v162_v50  ;;  %vm184_vm15 = vcmp.eq.f32.partialorder %v162_v50, 0.0 }
  0x3d   :  { %v261_v58 = vpop.eup %260 }
  0x3e   :  { %v263_v62 = vpop.eup %262  ;;  %v164_v2 = vmul.f32 %v261_v58, %v161_v49 }
  0x3f   :  { %v176_v6 = vmul.f32 %v263_v62, %v162_v50 }
  0x40   :  { %v165_v0 = vmul.f32 %v261_v58, %v164_v2 }
  0x41   :  { %v177_v15 = vmul.f32 %v263_v62, %v176_v6 }
  0x42   :  { %v166_v8 = vmul.f32 0.5, %v165_v0 }
  0x43   :  { %v178_v20 = vmul.f32 0.5, %v177_v15 }
  0x44   :  { %v167_v21 = vsub.f32 1.5, %v166_v8 }
  0x45   :  { %v179_v22 = vsub.f32 1.5, %v178_v20 }
  0x46   :  { %v168_v26 = vmul.f32 %v261_v58, %v167_v21 }
  0x47   :  { %v180_v29 = vmul.f32 %v263_v62, %v179_v22 }
  0x48   :  { %v169_v30 = vmul.f32 %v168_v26, %v161_v49 }
  0x49   :  { %v181_v32 = vmul.f32 %v180_v29, %v162_v50 }
  0x4a   :  { %v171_v34 = vsel %vm170_vm12, %v161_v49, %v169_v30 }
  0x4b   :  { %v174_v36 = vsel %vm172_vm13, %v173_v28, %v171_v34  ;;  %v183_v37 = vsel %vm182_vm14, %v162_v50, %v181_v32 }
  0x4c   :  { %v186_v38 = vsel %vm184_vm15, %v185_v31, %v183_v37  ;;  %v187_v39 = vmul.f32 %v174_v36, %v161_v49 }
  0x4d   :  { %v188_v40 = vmul.f32 %v186_v38, %v162_v50 }
  0x4e   :  { %v189_v41 = vmul.f32 %v187_v39, %v159_v33 }
  0x4f   :  { %v190_v42 = vmul.f32 %v188_v40, %v160_v35 }
  0x51   :  { %v217_v43 = vadd.f32 %v190_v42, %v189_v41 }
  0x53   :  { %219 = vst [vmem:[#allocation7] sm:$0xff] %v217_v43 }
  0x54   :  { %230 = dma.vmem_to_hbm [thread:$0]  %s226_s1, 128, %s228_s23, [#allocation4]  }
  0x55   :  { %340 = dma.done.wait [#allocation4], 128  }
  0x56   :  { %341 = vsyncadd [#allocation4], 4294967168 }
  0x57   :  { %235 = vsyncpa [#allocation3], 1 }
  0x58   :  { %236 = vsyncpa [#allocation6], 1 }
  0x59   :  { %237 = vsyncpa [#allocation4], 1 }

</bundles_post_ra>
